<compile_context>
chip_gen: v7x
topology: tpu7x:2x2x1
jax: 0.10.0
libtpu: 0.0.40
codegen_flags: <defaults>
</compile_context>

<pallas_src>
import math

import jax
import jax.numpy as jnp
from jax.experimental import pallas as pl
from jax.experimental.pallas import tpu as pltpu


def _round_up(v, m):
    return ((v + m - 1) // m) * m


def _use_bf16_softmax():
    # bf16 EUP/VPU exists on v6e/v7x; keep softmax math in f32 on v5e and older.
    try:
        kind = jax.devices()[0].device_kind.lower()
    except Exception:
        return False
    return any(tag in kind for tag in ("v6", "v7", "7x"))


def _make_kernel(C, cm_p, tk, hw, need_mask, bf16_exp):
    neg_inf = float("-inf")

    def kernel(xq_ref, kv_ref, wq_ref, bq_ref, alpha_ref, o_ref, q_s, m_s, acc_s):
        ki = pl.program_id(2)

        @pl.when(ki == 0)
        def _init():
            # Query projection for this Q tile, computed once and cached (bf16).
            x_q = xq_ref[0].astype(jnp.bfloat16)                         # (C, TQ)
            q = jnp.dot(wq_ref[...], x_q,
                        preferred_element_type=jnp.float32) + bq_ref[...]
            q_s[...] = q.astype(jnp.bfloat16)                            # (cm_p, TQ)
            m_s[...] = jnp.full_like(m_s, neg_inf)
            acc_s[...] = jnp.zeros_like(acc_s)

        # Precomputed K/V tile (bf16, streamed from HBM):
        #   rows [0:cm_p]        -> keys (bk dropped, softmax-invariant)
        #   rows [cm_p:cm_p+C]   -> values (+bv)
        #   row  [cm_p+C]        -> ones (fused softmax denominator)
        #   remaining rows       -> zero padding (sublane alignment)
        kv = kv_ref[0]                                                   # (R, TK)
        k = kv[:cm_p, :]                                                 # (cm_p, TK)
        v1 = kv[cm_p:, :]                                                # (c_acc, TK)

        # Scores in (TK, TQ) orientation, contracting the channel dim directly
        # (no explicit transpose of k; softmax stats broadcast over the accumulator).
        s = jax.lax.dot_general(
            k, q_s[...], dimension_numbers=(((0,), (0,)), ((), ())),
            preferred_element_type=jnp.float32)                          # (TK, TQ)

        if need_mask:
            col = jax.lax.broadcasted_iota(jnp.int32, (tk, 1), 0) + ki * tk
            s = jnp.where(col < hw, s, neg_inf)

        m_prev = m_s[...]                                                # (1, TQ)
        m_cur = jnp.maximum(m_prev, jnp.max(s, axis=0, keepdims=True))   # (1, TQ)
        corr = jnp.exp(m_prev - m_cur)                                   # (1, TQ)
        if bf16_exp:
            p = jnp.exp((s - m_cur).astype(jnp.bfloat16))                # (TK, TQ) bf16
        else:
            p = jnp.exp(s - m_cur).astype(jnp.bfloat16)
        # Values, ones row (denominator) and zero-pad rows accumulate in a single
        # MXU matmul; the online-softmax correction applies uniformly to all rows.
        acc_s[...] = corr * acc_s[...] + jnp.dot(
            v1, p, preferred_element_type=jnp.float32)                   # (c_acc, TQ)
        m_s[...] = m_cur

        @pl.when(ki == pl.num_programs(2) - 1)
        def _finalize():
            l = acc_s[C:C + 1, :]                                        # (1, TQ) denom
            scale = alpha_ref[0, 0] * pl.reciprocal(l, approx=True)      # (1, TQ)
            o_ref[0] = (acc_s[:C, :] * scale
                        + xq_ref[0].astype(jnp.float32)).astype(o_ref.dtype)

    return kernel


def pos_att_block(x, wq, bq, wk, bk, wv, bv, alpha, *, tq=None, tk=None):
    """PosAttBlock forward.

    x: (B, C, H, W); wq/wk: (C, Cm); bq/bk: (Cm,); wv: (C, C); bv: (C,);
    alpha: scalar or (1,). Returns (B, C, H, W).
    """
    B, C, H, W = x.shape
    HW = H * W
    Cm = wq.shape[1]
    cm_p = max(8, _round_up(Cm, 8))          # pad mid-channels to sublane multiple
    c_acc = _round_up(C + 1, 8)              # values + ones row (+ zero sublane pad)
    R = cm_p + c_acc

    def _pick(t):
        if t is not None:
            return t
        for cand in (512, 256, 128):
            if HW % cand == 0:
                return cand
        # Non-divisible resolutions: pad HW up to a <=512 tile multiple and mask
        # the padded key columns in-kernel (keeps VMEM bounded on v7x's 64 MiB).
        return min(512, _round_up(HW, 128))

    tq = _pick(tq)
    tk = _pick(tk)
    hw_pad = _round_up(HW, math.lcm(tq, tk))
    n_q, n_k = hw_pad // tq, hw_pad // tk
    need_mask = hw_pad != HW

    f32 = jnp.float32
    x_flat = x.reshape(B, C, HW).astype(f32)      # free reshape, (C, HW) layout
    if need_mask:
        x_flat = jnp.pad(x_flat, ((0, 0), (0, 0), (0, hw_pad - HW)))

    # ---- Hoisted K/V projection: once per image, stored bf16 in HBM ---------
    # bk is dropped (q . bk is constant over keys -> softmax invariant).  The extra
    # "ones" row is produced via a zero weight row with bias 1 and fuses the softmax
    # denominator into the kernel's aggregation matmul.
    wkv = jnp.zeros((R, C), f32)
    wkv = wkv.at[:Cm, :].set(wk.T.astype(f32))
    wkv = wkv.at[cm_p:cm_p + C, :].set(wv.T.astype(f32))
    bkv = jnp.zeros((R, 1), f32)
    bkv = bkv.at[cm_p:cm_p + C, 0].set(bv.astype(f32).reshape(-1))
    bkv = bkv.at[cm_p + C, 0].set(1.0)
    kv = (jnp.einsum("rc,bcs->brs", wkv, x_flat) + bkv[None]).astype(jnp.bfloat16)

    # ---- Query projection weights (zero-padded rows contribute nothing) -----
    wq_t = jnp.zeros((cm_p, C), f32).at[:Cm, :].set(wq.T.astype(f32)).astype(jnp.bfloat16)
    bq_p = jnp.zeros((cm_p, 1), f32).at[:Cm, 0].set(bq.astype(f32).reshape(-1))
    alpha_smem = jnp.asarray(alpha, dtype=f32).reshape(1, 1)

    kernel = _make_kernel(C, cm_p, tk, HW, need_mask, _use_bf16_softmax())

    flops = int(B * (2 * cm_p * C * hw_pad                  # query projection
                     + 2 * cm_p * hw_pad * hw_pad           # scores
                     + 2 * c_acc * hw_pad * hw_pad))        # aggregation (+ fused denom)
    transcendentals = int(B * hw_pad * hw_pad)
    bytes_accessed = int(4 * B * C * hw_pad * 2             # x in + out (f32)
                         + 2 * B * n_q * R * hw_pad         # kv re-streamed per Q tile (bf16)
                         + 2 * cm_p * C + 4 * cm_p + 4)

    out_flat = pl.pallas_call(
        kernel,
        out_shape=jax.ShapeDtypeStruct((B, C, hw_pad), x.dtype),
        grid_spec=pltpu.PrefetchScalarGridSpec(
            num_scalar_prefetch=0,
            grid=(B, n_q, n_k),
            in_specs=[
                pl.BlockSpec((1, C, tq), lambda b, qi, ki: (b, 0, qi)),   # x (Q tile + residual)
                pl.BlockSpec((1, R, tk), lambda b, qi, ki: (b, 0, ki)),   # precomputed K/V (+ones)
                pl.BlockSpec((cm_p, C), lambda b, qi, ki: (0, 0)),        # Wq^T (padded, bf16)
                pl.BlockSpec((cm_p, 1), lambda b, qi, ki: (0, 0)),        # bq
                pl.BlockSpec((1, 1), lambda b, qi, ki: (0, 0),
                             memory_space=pltpu.SMEM),                    # alpha
            ],
            out_specs=pl.BlockSpec((1, C, tq), lambda b, qi, ki: (b, 0, qi)),
            scratch_shapes=[
                pltpu.VMEM((cm_p, tq), jnp.bfloat16),   # cached query tile (bf16)
                pltpu.VMEM((1, tq), jnp.float32),       # running max
                pltpu.VMEM((c_acc, tq), jnp.float32),   # [values | denominator] accumulator
            ],
        ),
        compiler_params=pltpu.CompilerParams(
            dimension_semantics=("parallel", "parallel", "arbitrary")),
        cost_estimate=pl.CostEstimate(flops=flops,
                                      transcendentals=transcendentals,
                                      bytes_accessed=bytes_accessed),
    )(x_flat, kv, wq_t, bq_p, alpha_smem)

    if need_mask:
        out_flat = out_flat[:, :, :HW]
    return out_flat.reshape(B, C, H, W)


def _reference(x, wq, bq, wk, bk, wv, bv, alpha):
    """Plain-JAX (f32) mirror of the PyTorch forward, for correctness check."""
    B, C, H, W = x.shape
    HW = H * W
    xf = x.reshape(B, C, HW)
    q = jnp.einsum('cm,bcs->bms', wq, xf) + bq[None, :, None]      # (B, Cm, HW)
    k = jnp.einsum('cm,bcs->bms', wk, xf) + bk[None, :, None]
    v = jnp.einsum('cd,bcs->bds', wv, xf) + bv[None, :, None]      # (B, C, HW)
    energy = jnp.einsum('bmi,bmj->bij', q, k)                      # (B, HW, HW)
    w = jax.nn.softmax(energy, axis=-1)
    y = jnp.einsum('bcj,bij->bci', v, w)                           # (B, C, HW)
    out = alpha[0] * y + xf
    return out.reshape(B, C, H, W)


if __name__ == "__main__":
    # Small shapes consistent with PosAttBlock(channels=32, reduction=8).
    B, C, H, W = 2, 32, 16, 16        # HW = 256 -> exercises the flash tiling (2x2 tiles)
    reduction = 8
    Cm = C // reduction

    key = jax.random.PRNGKey(0)
    ks = jax.random.split(key, 7)
    x = jax.random.normal(ks[0], (B, C, H, W), dtype=jnp.float32)
    wq = 0.1 * jax.random.normal(ks[1], (C, Cm), dtype=jnp.float32)
    bq = 0.05 * jax.random.normal(ks[2], (Cm,), dtype=jnp.float32)
    wk = 0.1 * jax.random.normal(ks[3], (C, Cm), dtype=jnp.float32)
    bk = 0.05 * jax.random.normal(ks[4], (Cm,), dtype=jnp.float32)
    wv = 0.1 * jax.random.normal(ks[5], (C, C), dtype=jnp.float32)
    bv = 0.05 * jax.random.normal(ks[6], (C,), dtype=jnp.float32)
    alpha = jnp.array([0.75], dtype=jnp.float32)   # ScaleBlock alpha parameter

    out = pos_att_block(x, wq, bq, wk, bk, wv, bv, alpha, tq=128, tk=128)
    out = jax.block_until_ready(out)

    ref = _reference(x, wq, bq, wk, bk, wv, bv, alpha)
    assert out.shape == (B, C, H, W)
    # bf16 MXU operands / bf16 exp on v6e+ / approx reciprocal => compare against the
    # f32 reference with a correspondingly loosened tolerance.
    err = float(jnp.max(jnp.abs(out - ref)))
    assert jnp.allclose(out, ref, atol=3e-2, rtol=3e-2), f"max abs err = {err}"

    print("KERNEL_OK")
</pallas_src>

<mosaic_0001>
module attributes {stable_mosaic.version = 11 : i64} {
  func.func @kernel(%arg0: i32, %arg1: i32, %arg2: i32, %arg3: memref<1x32x128xf32, #tpu.memory_space<vmem>>, %arg4: memref<1x48x128xbf16, #tpu.memory_space<vmem>>, %arg5: memref<8x32xbf16, #tpu.memory_space<vmem>>, %arg6: memref<8x1xf32, #tpu.memory_space<vmem>>, %arg7: memref<1x1xf32, #tpu.memory_space<smem>>, %arg8: memref<1x32x128xf32, #tpu.memory_space<vmem>>, %arg9: memref<8x128xbf16, #tpu.memory_space<vmem>>, %arg10: memref<1x128xf32, #tpu.memory_space<vmem>>, %arg11: memref<40x128xf32, #tpu.memory_space<vmem>>) attributes {dimension_semantics = [#tpu.dimension_semantics<parallel>, #tpu.dimension_semantics<parallel>, #tpu.dimension_semantics<arbitrary>], iteration_bounds = array<i64: 2, 2, 2>, scalar_prefetch = 0 : i64, scratch_operands = 3 : i64, tpu.core_type = #tpu.core_type<tc>, window_params = [{transform_indices = @transform_0, window_bounds = array<i64: 1, 32, 128>}, {transform_indices = @transform_1, window_bounds = array<i64: 1, 48, 128>}, {pipeline_mode = #tpu.pipeline_mode<synchronous>, transform_indices = @transform_2, window_bounds = array<i64: 8, 32>}, {pipeline_mode = #tpu.pipeline_mode<synchronous>, transform_indices = @transform_3, window_bounds = array<i64: 8, 1>}, {transform_indices = @transform_4, window_bounds = array<i64: 1, 1>}, {transform_indices = @transform_5, window_bounds = array<i64: 1, 32, 128>}]} {
    %c0_i32 = arith.constant 0 : i32
    %0 = arith.cmpi eq, %arg2, %c0_i32 : i32
    %1 = arith.extui %0 : i1 to i32
    %c0_i32_0 = arith.constant 0 : i32
    %2 = arith.cmpi ne, %1, %c0_i32_0 : i32
    scf.if %2 {
      %c0_16 = arith.constant 0 : index
      %c0_17 = arith.constant 0 : index
      %c0_18 = arith.constant 0 : index
      %29 = vector.load %arg3[%c0_16, %c0_17, %c0_18] : memref<1x32x128xf32, #tpu.memory_space<vmem>>, vector<1x32x128xf32>
      %30 = vector.shape_cast %29 : vector<1x32x128xf32> to vector<32x128xf32>
      %31 = arith.truncf %30 : vector<32x128xf32> to vector<32x128xbf16>
      %c0_19 = arith.constant 0 : index
      %c0_20 = arith.constant 0 : index
      %32 = vector.load %arg5[%c0_19, %c0_20] : memref<8x32xbf16, #tpu.memory_space<vmem>>, vector<8x32xbf16>
      %cst_21 = arith.constant dense<0.000000e+00> : vector<8x128xf32>
      %33 = tpu.matmul %32, %31, %cst_21 {dimension_numbers = #tpu.dot_dimension_numbers<[1], [0], [0], [1], [0, 0, 1, 1], [], []>} : vector<8x32xbf16>, vector<32x128xbf16>, vector<8x128xf32> -> vector<8x128xf32>
      %c0_22 = arith.constant 0 : index
      %c0_23 = arith.constant 0 : index
      %34 = vector.load %arg6[%c0_22, %c0_23] : memref<8x1xf32, #tpu.memory_space<vmem>>, vector<8x1xf32>
      %35 = vector.broadcast %34 : vector<8x1xf32> to vector<8x128xf32>
      %36 = arith.addf %33, %35 : vector<8x128xf32>
      %37 = arith.truncf %36 : vector<8x128xf32> to vector<8x128xbf16>
      %c0_24 = arith.constant 0 : index
      %c0_25 = arith.constant 0 : index
      %38 = vector.load %arg9[%c0_24, %c0_25] : memref<8x128xbf16, #tpu.memory_space<vmem>>, vector<8x128xbf16>
      tpu.vector_store %arg9[%c0_24, %c0_25], %37 {strides = array<i32>} : memref<8x128xbf16, #tpu.memory_space<vmem>>, vector<8x128xbf16>,
      %cst_26 = arith.constant 0xFF800000 : f32
      %39 = vector.broadcast %cst_26 : f32 to vector<1x128xf32>
      %c0_27 = arith.constant 0 : index
      %c0_28 = arith.constant 0 : index
      %40 = vector.load %arg10[%c0_27, %c0_28] : memref<1x128xf32, #tpu.memory_space<vmem>>, vector<1x128xf32>
      tpu.vector_store %arg10[%c0_27, %c0_28], %39 {strides = array<i32>} : memref<1x128xf32, #tpu.memory_space<vmem>>, vector<1x128xf32>,
      %cst_29 = arith.constant 0.000000e+00 : f32
      %41 = vector.broadcast %cst_29 : f32 to vector<40x128xf32>
      %c0_30 = arith.constant 0 : index
      %c0_31 = arith.constant 0 : index
      %42 = vector.load %arg11[%c0_30, %c0_31] : memref<40x128xf32, #tpu.memory_space<vmem>>, vector<40x128xf32>
      tpu.vector_store %arg11[%c0_30, %c0_31], %41 {strides = array<i32>} : memref<40x128xf32, #tpu.memory_space<vmem>>, vector<40x128xf32>,
    } else {
    }
    %c0 = arith.constant 0 : index
    %c0_1 = arith.constant 0 : index
    %c0_2 = arith.constant 0 : index
    %3 = vector.load %arg4[%c0, %c0_1, %c0_2] : memref<1x48x128xbf16, #tpu.memory_space<vmem>>, vector<1x48x128xbf16>
    %4 = vector.shape_cast %3 : vector<1x48x128xbf16> to vector<48x128xbf16>
    %5 = vector.extract_strided_slice %4 {offsets = [0, 0], sizes = [8, 128], strides = [1, 1]} : vector<48x128xbf16> to vector<8x128xbf16>
    %6 = vector.extract_strided_slice %4 {offsets = [8, 0], sizes = [40, 128], strides = [1, 1]} : vector<48x128xbf16> to vector<40x128xbf16>
    %c0_3 = arith.constant 0 : index
    %c0_4 = arith.constant 0 : index
    %7 = vector.load %arg9[%c0_3, %c0_4] : memref<8x128xbf16, #tpu.memory_space<vmem>>, vector<8x128xbf16>
    %cst = arith.constant dense<0.000000e+00> : vector<128x128xf32>
    %8 = tpu.matmul %5, %7, %cst {dimension_numbers = #tpu.dot_dimension_numbers<[0], [0], [1], [1], [0, 1, 1, 1], [], []>} : vector<8x128xbf16>, vector<8x128xbf16>, vector<128x128xf32> -> vector<128x128xf32>
    %c0_5 = arith.constant 0 : index
    %c0_6 = arith.constant 0 : index
    %9 = vector.load %arg10[%c0_5, %c0_6] : memref<1x128xf32, #tpu.memory_space<vmem>>, vector<1x128xf32>
    %cst_7 = arith.constant dense<0xFF800000> : vector<128xf32>
    %10 = vector.multi_reduction <maximumf>, %8, %cst_7 [0] : vector<128x128xf32> to vector<128xf32>
    %11 = vector.shape_cast %10 : vector<128xf32> to vector<1x128xf32>
    %12 = arith.maximumf %9, %11 : vector<1x128xf32>
    %13 = arith.subf %9, %12 : vector<1x128xf32>
    %14 = math.exp %13 : vector<1x128xf32>
    %15 = vector.broadcast %12 : vector<1x128xf32> to vector<128x128xf32>
    %16 = arith.subf %8, %15 : vector<128x128xf32>
    %17 = math.exp %16 : vector<128x128xf32>
    %18 = arith.truncf %17 : vector<128x128xf32> to vector<128x128xbf16>
    %c0_8 = arith.constant 0 : index
    %c0_9 = arith.constant 0 : index
    %19 = vector.load %arg11[%c0_8, %c0_9] : memref<40x128xf32, #tpu.memory_space<vmem>>, vector<40x128xf32>
    %20 = vector.broadcast %14 : vector<1x128xf32> to vector<40x128xf32>
    %21 = arith.mulf %20, %19 : vector<40x128xf32>
    %cst_10 = arith.constant dense<0.000000e+00> : vector<40x128xf32>
    %22 = tpu.matmul %6, %18, %cst_10 {dimension_numbers = #tpu.dot_dimension_numbers<[1], [0], [0], [1], [0, 0, 1, 1], [], []>} : vector<40x128xbf16>, vector<128x128xbf16>, vector<40x128xf32> -> vector<40x128xf32>
    %23 = arith.addf %21, %22 : vector<40x128xf32>
    %c0_11 = arith.constant 0 : index
    %c0_12 = arith.constant 0 : index
    %24 = vector.load %arg11[%c0_11, %c0_12] : memref<40x128xf32, #tpu.memory_space<vmem>>, vector<40x128xf32>
    tpu.vector_store %arg11[%c0_11, %c0_12], %23 {strides = array<i32>} : memref<40x128xf32, #tpu.memory_space<vmem>>, vector<40x128xf32>,
    %c0_13 = arith.constant 0 : index
    %c0_14 = arith.constant 0 : index
    %25 = vector.load %arg10[%c0_13, %c0_14] : memref<1x128xf32, #tpu.memory_space<vmem>>, vector<1x128xf32>
    tpu.vector_store %arg10[%c0_13, %c0_14], %12 {strides = array<i32>} : memref<1x128xf32, #tpu.memory_space<vmem>>, vector<1x128xf32>,
    %c1_i32 = arith.constant 1 : i32
    %26 = arith.cmpi eq, %arg2, %c1_i32 : i32
    %27 = arith.extui %26 : i1 to i32
    %c0_i32_15 = arith.constant 0 : i32
    %28 = arith.cmpi ne, %27, %c0_i32_15 : i32
    scf.if %28 {
      %c32 = arith.constant 32 : index
      %c0_16 = arith.constant 0 : index
      %29 = vector.load %arg11[%c32, %c0_16] : memref<40x128xf32, #tpu.memory_space<vmem>>, vector<1x128xf32>
      %c0_17 = arith.constant 0 : index
      %c0_18 = arith.constant 0 : index
      %30 = memref.load %arg7[%c0_17, %c0_18] : memref<1x1xf32, #tpu.memory_space<smem>>
      %31 = tpu.reciprocal %29 {approx = true} : vector<1x128xf32> -> vector<1x128xf32>
      %32 = vector.broadcast %30 : f32 to vector<1x128xf32>
      %33 = arith.mulf %32, %31 : vector<1x128xf32>
      %c0_19 = arith.constant 0 : index
      %c0_20 = arith.constant 0 : index
      %34 = vector.load %arg11[%c0_19, %c0_20] : memref<40x128xf32, #tpu.memory_space<vmem>>, vector<32x128xf32>
      %35 = vector.broadcast %33 : vector<1x128xf32> to vector<32x128xf32>
      %36 = arith.mulf %34, %35 : vector<32x128xf32>
      %c0_21 = arith.constant 0 : index
      %c0_22 = arith.constant 0 : index
      %c0_23 = arith.constant 0 : index
      %37 = vector.load %arg3[%c0_21, %c0_22, %c0_23] : memref<1x32x128xf32, #tpu.memory_space<vmem>>, vector<1x32x128xf32>
      %38 = vector.shape_cast %37 : vector<1x32x128xf32> to vector<32x128xf32>
      %39 = arith.addf %36, %38 : vector<32x128xf32>
      %c0_24 = arith.constant 0 : index
      %c0_25 = arith.constant 0 : index
      %c0_26 = arith.constant 0 : index
      %40 = vector.load %arg8[%c0_24, %c0_25, %c0_26] : memref<1x32x128xf32, #tpu.memory_space<vmem>>, vector<1x32x128xf32>
      %41 = vector.shape_cast %40 : vector<1x32x128xf32> to vector<32x128xf32>
      %42 = vector.shape_cast %39 : vector<32x128xf32> to vector<1x32x128xf32>
      tpu.vector_store %arg8[%c0_24, %c0_25, %c0_26], %42 {strides = array<i32>} : memref<1x32x128xf32, #tpu.memory_space<vmem>>, vector<1x32x128xf32>,
    } else {
    }
    return
  }
  func.func @transform_0(%arg0: i32, %arg1: i32, %arg2: i32) -> (i32, i32, i32) {
    %c0_i32 = arith.constant 0 : i32
    %c0_i32_0 = arith.constant 0 : i32
    return %arg0, %c0_i32, %arg1 : i32, i32, i32
  }
  func.func @transform_1(%arg0: i32, %arg1: i32, %arg2: i32) -> (i32, i32, i32) {
    %c0_i32 = arith.constant 0 : i32
    %c0_i32_0 = arith.constant 0 : i32
    return %arg0, %c0_i32, %arg2 : i32, i32, i32
  }
  func.func @transform_2(%arg0: i32, %arg1: i32, %arg2: i32) -> (i32, i32) {
    %c0_i32 = arith.constant 0 : i32
    %c0_i32_0 = arith.constant 0 : i32
    %c0_i32_1 = arith.constant 0 : i32
    return %c0_i32, %c0_i32_0 : i32, i32
  }
  func.func @transform_3(%arg0: i32, %arg1: i32, %arg2: i32) -> (i32, i32) {
    %c0_i32 = arith.constant 0 : i32
    %c0_i32_0 = arith.constant 0 : i32
    %c0_i32_1 = arith.constant 0 : i32
    return %c0_i32, %c0_i32_0 : i32, i32
  }
  func.func @transform_4(%arg0: i32, %arg1: i32, %arg2: i32) -> (i32, i32) {
    %c0_i32 = arith.constant 0 : i32
    %c0_i32_0 = arith.constant 0 : i32
    %c0_i32_1 = arith.constant 0 : i32
    return %c0_i32, %c0_i32_0 : i32, i32
  }
  func.func @transform_5(%arg0: i32, %arg1: i32, %arg2: i32) -> (i32, i32, i32) {
    %c0_i32 = arith.constant 0 : i32
    %c0_i32_0 = arith.constant 0 : i32
    return %arg0, %c0_i32, %arg1 : i32, i32, i32
  }
}

</mosaic_0001>

<bundles_post_ra>
// kernel: tpu_custom_call.1
= control target key start
LH: loop header
LB: loop body
LE: loop exit
PB: predicated region body
PF: predicated region fallthrough
CT: control target
= control target key end

     0   :  { %s1886_s0 = inlined_call_operand.hbm [shape: f32[2,32,256], index: 0, kind: input, shape index: {}]   ;;  %s1887_s1 = inlined_call_operand.hbm [shape: bf16[2,48,256], index: 1, kind: input, shape index: {}]   ;;  %s1888_s2 = inlined_call_operand.vmem [shape: bf16[8,32], index: 2, kind: input, shape index: {}]   ;;  %s1889_s3 = inlined_call_operand.vmem [shape: f32[8,1], index: 3, kind: input, shape index: {}]   ;;  %s1890_s4 = inlined_call_operand.<no memory space> [shape: f32[1,1], index: 4, kind: input, shape index: {}]   ;;  %s1891_s5 = inlined_call_operand.hbm [shape: f32[2,32,256], index: 5, kind: output, shape index: {}]  }
   0x1   :  { %1910 = sst [smem:[#allocation25_spill]] %s1886_s0 }
   0x2   :  { %1911 = sst [smem:[#allocation26_spill]] %s1891_s5 }
   0x3   :  { %10 = sst [smem:[#allocation5]] %s1890_s4 }
   0x4   :  { %11 = vsyncpa [#allocation7], 0 }
   0x5   :  { %13 = vsyncpa [#allocation7 + $0x1], 0 }
   0x6   :  { %14 = vsyncpa [#allocation10], 0 }
   0x7   :  { %16 = vsyncpa [#allocation10 + $0x1], 0 }
   0x8   :  { %17 = vsyncpa [#allocation8], 0 }
   0x9   :  { %19 = vsyncpa [#allocation8 + $0x1], 0  ;;  %s1443_s20 = smov 0   ;;  %s1445_s21 = smov 0  }
   0xa   :  { %s1447_s22 = smov 0   ;;  %s1449_s23 = smov 0  }
   0xb   :  { %s1451_s24 = smov 0   ;;  %s1453_s25 = smov 0  }
   0xc   :  { %s1455_s26 = smov 0   ;;  %s1457_s4 = smov 0  }
   0xd   :  { %s1459_s27 = smov 0   ;;  %s1461_s28 = smov 0  }
   0xe   :  { %s1463_s29 = smov 0   ;;  %s1465_s30 = smov 0  }
   0xf   :  { %s1467_s6 = smov 0  }
  0x10 LB: > { %1912 = sst [smem:[#allocation15_spill]] %s1355_s23  ;;  %s884_s7 = sadd.s32 4294967295, %s1391_s6   ;;  %s1391_s6 = sphi %s1467_s6, %s25_s6   ;;  %s1387_s30 = sphi %s1465_s30, %s1964_s30   ;;  %s1383_s29 = sphi %s1463_s29, %s1963_s29   ;;  %s1379_s28 = sphi %s1461_s28, %s1952_s28   ;;  %s1375_s27 = sphi %s1459_s27, %s1962_s27   ;;  %s1371_s4 = sphi %s1457_s4, %s1961_s4   ;;  %s1367_s26 = sphi %s1455_s26, %s1950_s26   ;;  %s1363_s25 = sphi %s1453_s25, %s1960_s25   ;;  %s1359_s24 = sphi %s1451_s24, %s1959_s24   ;;  %s1355_s23 = sphi %s1449_s23, %s1958_s23   ;;  %s1351_s22 = sphi %s1447_s22, %s1957_s22   ;;  %s1347_s21 = sphi %s1445_s21, %s1956_s21   ;;  %s1343_s20 = sphi %s1443_s20, %s1955_s20  }
  0x11   : > { %1913 = sst [smem:[#allocation16_spill]] %s1371_s4  ;;  %s885_s8 = sadd.s32 4294967294, %s1391_s6  }
  0x12   : > { %1914 = sst [smem:[#allocation17_spill]] %s1379_s28  ;;  %p60_p0 = scmp.ne.s32.totalorder %s1363_s25, %s1359_s24 }
  0x13   : > { %1915 = sst [smem:[#allocation18_spill]] %s1383_s29  ;;  %p1896_p1 = scmp.eq.s32.totalorder %s1391_s6, 0 }
  0x14   : > { %1916 = sst [smem:[#allocation19_spill]] %s1391_s6  ;;  %p66_p2 = scmp.ne.s32.totalorder %s1359_s24, %s1355_s23 }
  0x15   : > { %p1517_p3 = scmp.eq.s32.totalorder %s884_s7, 0  ;;  %p1523_p4 = por %p1896_p1, %p60_p0 }
  0x16   : > { %p183_p5 = scmp.eq.s32.totalorder %s884_s7, 7  ;;  %p189_p7 = scmp.eq.s32.totalorder %s885_s8, 7 }
  0x17   : > { %p1529_p6 = por %p1517_p3, %p66_p2  ;;  %p1895_p10 = scmp.lt.s32.totalorder %s1391_s6, 8 }
  0x18   : > { %p1533_p8 = por %p183_p5, %p60_p0  ;;  %p1537_p9 = por %p189_p7, %p66_p2 }
  0x19   : > { %s1919_s13 = scalar_select %p1529_p6, 1, 0 }
  0x1a   : > { %s1920_s14 = scalar_select %p1533_p8, 1, 0 }
  0x1b   : > { %s1922_s15 = scalar_select %p1537_p9, 1, 0 }
  0x1c   : > { %1921 = sst [smem:[#allocation20_spill]] %s1920_s14  ;;  %s218_s16 = sand.u32 1, %s1363_s25  }
  0x1d   : > { %1923 = sst [smem:[#allocation21_spill]] %s1922_s15  ;;  %s889_s17 = sshll.u32 %s1387_s30, 3 }
  0x1e   : > { %s888_s18 = sshll.u32 %s218_s16, 5  ;;  %s227_s19 = sadd.s32 %s1383_s29, %s889_s17 }
  0x1f   : > { %s890_s7 = sshll.u32 %s227_s19, 7  ;;  %s222_s10 = scalar_lea.vmem [#allocation6], %s888_s18 }
  0x20   : > { %s230_s9 = sshll.u32 %s222_s10, 4  ;;  %s1924_s0 = sld [smem:[#allocation25_spill]]  ;;  %s1550_s9 = int_to_ptr.vmem [resolvable:$true] %s230_s9 }
  0x21   : > { %p1556_p11 = pnand %p1895_p10, %p1523_p4  ;;  %s1561_s10 = scalar_lea.sflag [#allocation7], %s218_s16 }
  0x23   : > { %p1191_p0 = pneg %p1556_p11 }
  0x26   : > { %s1548_s8 = scalar_lea.hbm %s1924_s0, %s890_s7  ;;  %s1194_s17 = scalar_lea.hbm %s1924_s0, 2048 }
  0x27   : > { %s1189_s5 = scalar_lea.hbm %s1548_s8, 512  ;;  %p1195_p4 = scmp.lt.u32.totalorder %s1548_s8, %s1924_s0 }
  0x28   : > { %p1190_p13 = scmp.ne.s32.totalorder %s1548_s8, %s1189_s5  ;;  %p1196_p7 = scmp.lt.u32.totalorder %s1194_s17, %s1189_s5 }
  0x29   : > { %p1198_p1 = scmp.lt.u32.totalorder %s1189_s5, %s1548_s8 }
  0x2a   : > { %p1192_p2 = pnand %p1191_p0, %p1190_p13  ;;  %p1197_p10 = por %p1196_p7, %p1195_p4 }
  0x2c   : > { %p1193_p5 = pneg %p1192_p2  ;;  %p1199_p12 = por %p1198_p1, %p1197_p10 }
  0x2e   : > { %p1200_p9 = pnand %p1199_p12, %p1193_p5 }
  0x30   : > { %1203 = shalt.err (!%p1200_p9)
}
  0x31   : > { %s1204_s16 = scalar_lea.vmem %s1550_s9, 512  ;;  %s1393_s7 = smov [#allocation6]  }
  0x32   : > { %p1205_p13 = scmp.ne.s32.totalorder %s1550_s9, %s1204_s16  ;;  %s1209_s23 = sshll.u32 %s1393_s7, 4  ;;  %s1210_s23 = int_to_ptr.vmem [resolvable:$false] %s1209_s23 }
  0x33   : > { %s1211_s12 = scalar_lea.vmem %s1210_s23, 1024  ;;  %p1212_p6 = scmp.lt.s32.totalorder %s1550_s9, %s1210_s23 }
  0x34   : > { %p1207_p2 = pnand %p1205_p13, %p1191_p0  ;;  %p1213_p4 = scmp.lt.s32.totalorder %s1211_s12, %s1204_s16 }
  0x36   : > { %p1208_p8 = pneg %p1207_p2  ;;  %p1214_p7 = por %p1213_p4, %p1212_p6 }
  0x38   : > { %p1215_p1 = pnand %p1214_p7, %p1208_p8 }
  0x3a   : > { %1218 = shalt.err (!%p1215_p1)
}
  0x3b   : > { %s1394_s5 = smov 256   ;;  %s1899_s17 = smov 128  }
  0x3c   : > { %s1396_s18 = smov 8   ;;  %p260_p6 = scmp.lt.s32.totalorder %s1391_s6, 9 }
  0x3d   : > { %1020 = dma.hbm_to_vmem [thread:$0]  (!%p1556_p11), %s1548_s8, 512, %s1550_s9, %s1561_s10, %s1394_s5, %s1899_s17, %s1396_s18  }
  0x3e   : > { %p1926_p8 = scmp.ge.s32.totalorder %s1391_s6, 1  ;;  %s37_s16 = sadd.s32 1, %s1379_s28 }
  0x3f   : > { %s44_s7 = sadd.s32 1, %s1387_s30  ;;  %p38_p10 = scmp.ge.s32.totalorder %s37_s16, 2 }
  0x40   : > { %p1593_p9 = pnand %p1926_p8, %p260_p6  ;;  %p88_p12 = scmp.ne.s32.totalorder %s1351_s22, %s1347_s21 }
  0x41   : > { %p94_p0 = scmp.ne.s32.totalorder %s1347_s21, %s1343_s20  ;;  %s1966_s16 = smov (%p38_p10, %s37_s16), 0 }
  0x42   : > { %1928 = sst [smem:[#allocation22_spill]] %s1966_s16  ;;  %s1929_s9 = sadd.s32 1, %s1383_s29 }
  0x43   : > { %s1968_s9 = smov (!%p38_p10, %s1929_s9), %s1383_s29  ;;  %s77_s15 = ssub.s32 %s1379_s28, %s1966_s16 }
  0x44   : > { %p1930_p11 = scmp.eq.s32.totalorder %s1391_s6, 0  ;;  %p42_p13 = scmp.ge.s32.totalorder %s1968_s9, 2 }
  0x45   : > { %p1615_p2 = por %p94_p0, %p1517_p3  ;;  %s240_s10 = sand.u32 1, %s1351_s22  }
  0x46   : > { %p90_p5 = por %p88_p12, %p1930_p11  ;;  %s1009_s12 = smul.u32 12, %s1387_s30 }
  0x47   : > { %s1931_s8 = scalar_select %p1615_p2, 1, 0 }
  0x48   : > { %s1970_s9 = smov (%p42_p13, %s1968_s9), 0  ;;  %s1972_s7 = smov (!%p42_p13, %s44_s7), %s1387_s30 }
  0x49   : > { %1932 = sst [smem:[#allocation23_spill]] %s1970_s9  ;;  %s49_s20 = ssub.s32 %s1383_s29, %s1970_s9 }
  0x4a   : > { %p46_p4 = scmp.ge.s32.totalorder %s1972_s7, 2  ;;  %s1008_s5 = smul.u32 24, %s240_s10 }
  0x4b   : > { %s249_s18 = sadd.s32 %s1379_s28, %s1009_s12  ;;  %p1933_p7 = scmp.lt.s32.totalorder %s1391_s6, 8 }
  0x4c   : > { %s1974_s7 = smov (%p46_p4, %s1972_s7), 0  ;;  %s891_s17 = sshll.u32 %s249_s18, 6 }
  0x4d   : > { %p1629_p1 = pnand %p1933_p7, %p90_p5  ;;  %1935 = sst [smem:[#allocation24_spill]] %s1974_s7 }
  0x4e   : > { %s48_s23 = ssub.s32 %s1387_s30, %s1974_s7  ;;  %s1640_s9 = scalar_lea.hbm %s1887_s1, %s891_s17 }
  0x4f   : > { %s50_s12 = sor.u32 %s49_s20, %s48_s23  ;;  %s78_s29 = sor.u32 %s77_s15, %s48_s23 }
  0x50   : > { %p51_p3 = scmp.eq.s32.totalorder %s50_s12, 0  ;;  %p79_p6 = scmp.eq.s32.totalorder %s78_s29, 0 }
  0x51   : > { %s244_s28 = scalar_lea.vmem [#allocation9], %s1008_s5  ;;  %s1936_s14 = sadd.s32 1, %s1363_s25 }
  0x52   : > { %s252_s6 = sshll.u32 %s244_s28, 4  ;;  %s1937_s18 = sadd.s32 1, %s1351_s22  ;;  %s1652_s6 = int_to_ptr.vmem [resolvable:$true] %s252_s6 }
  0x53   : > { %s1645_s4 = scalar_select %p51_p3, %s1363_s25, %s1936_s14  }
  0x54   : > { %s1650_s7 = scalar_select %p79_p6, %s1351_s22, %s1937_s18  }
  0x55   : > { %s1654_s0 = scalar_lea.sflag [#allocation10], %s240_s10  ;;  %s1219_s17 = scalar_lea.hbm %s1640_s9, 384 }
  0x56   : > { %p1220_p8 = scmp.ne.s32.totalorder %s1640_s9, %s1219_s17  ;;  %p1221_p10 = pneg %p1629_p1 }
  0x57   : > { %s1224_s14 = scalar_lea.hbm %s1887_s1, 1536  ;;  %p1225_p11 = scmp.lt.u32.totalorder %s1640_s9, %s1887_s1 }
  0x58   : > { %p1222_p12 = pnand %p1221_p10, %p1220_p8  ;;  %p1226_p5 = scmp.lt.u32.totalorder %s1224_s14, %s1219_s17 }
  0x59   : > { %p1228_p4 = scmp.lt.u32.totalorder %s1219_s17, %s1640_s9 }
  0x5a   : > { %p1223_p0 = pneg %p1222_p12  ;;  %p1227_p13 = por %p1226_p5, %p1225_p11 }
  0x5c   : > { %p1229_p7 = por %p1228_p4, %p1227_p13 }
  0x5e   : > { %p1230_p3 = pnand %p1229_p7, %p1223_p0 }
  0x60   : > { %1233 = shalt.err (!%p1230_p3)
}
  0x61   : > { %s1234_s15 = scalar_lea.vmem %s1652_s6, 384  ;;  %s1397_s10 = smov [#allocation9]  }
  0x62   : > { %p1235_p6 = scmp.ne.s32.totalorder %s1652_s6, %s1234_s15  ;;  %s1239_s20 = sshll.u32 %s1397_s10, 4  ;;  %s1240_s20 = int_to_ptr.vmem [resolvable:$false] %s1239_s20 }
  0x63   : > { %s1241_s5 = scalar_lea.vmem %s1240_s20, 768  ;;  %p1242_p2 = scmp.lt.s32.totalorder %s1652_s6, %s1240_s20 }
  0x64   : > { %p1237_p8 = pnand %p1235_p6, %p1221_p10  ;;  %p1243_p11 = scmp.lt.s32.totalorder %s1241_s5, %s1234_s15 }
  0x66   : > { %p1238_p12 = pneg %p1237_p8  ;;  %p1244_p5 = por %p1243_p11, %p1242_p2 }
  0x68   : > { %p1245_p13 = pnand %p1244_p5, %p1238_p12 }
  0x6a   : > { %1248 = shalt.err (!%p1245_p13)
}
  0x6b   : > { %s1398_s12 = smov 64   ;;  %s1399_s18 = smov 4  }
  0x6c   : > { %s1938_s17 = smov 128   ;;  %264 = sbr.rel (%p1593_p9) target bundleno = 1048 (0x418), region = 40 }
  0x6d   : > { %1023 = dma.hbm_to_vmem [thread:$0]  (!%p1629_p1), %s1640_s9, 384, %s1652_s6, %s1654_s0, %s1938_s17, %s1398_s12, %s1399_s18  }
  0x6e   : > { %s1686_s29 = sand.u32 (!%p1593_p9), 1, %s1359_s24   ;;  %p1939_p2 = scmp.ne.s32.totalorder (!%p1593_p9), %s1919_s13, 0 }
  0x6f   : > { %s893_s28 = sshll.u32 (!%p1593_p9), %s1686_s29, 5  ;;  %s267_s14 = scalar_lea.sflag (!%p1593_p9), [#allocation7], %s1686_s29 }
  0x70   : > { %s1690_s16 = scalar_lea.vmem (!%p1593_p9), [#allocation6], %s893_s28 }
  0x73   : > { %1330 = dma.done.wait (%p1939_p2), %s267_s14, 512  }
  0x74   : > { %1332 = vsyncadd (%p1939_p2), %s267_s14, 4294966784  ;;  %s275_s6 = sand.u32 1, %s1347_s21   ;;  %p1940_p9 = scmp.ne.s32.totalorder %s1931_s8, 0 }
  0x75   : > { %s1010_s19 = smul.u32 24, %s275_s6  ;;  %s276_s9 = scalar_lea.sflag [#allocation10], %s275_s6 }
  0x77   : > { %s1697_s11 = scalar_lea.vmem [#allocation9], %s1010_s19 }
  0x78   : > { %1334 = dma.done.wait (%p1940_p9), %s276_s9, 384  }
  0x79   : > { %1336 = vsyncadd (%p1940_p9), %s276_s9, 4294966912  ;;  %s1703_s0 = scalar_lea.vmem [#allocation11], %s893_s28  ;;  %p895_p1 = scmp.ne.s32.totalorder %s1367_s26, 0 }
  0x7a   : > { %v316_v0 = vld [vmem:[%s1690_s16] sm:$0xff] (!%p895_p1)  ;;  %v317_v1 = vld [vmem:[%s1690_s16 + $0x8] sm:$0xff] (!%p895_p1)  ;;  %v318_v2 = vld [vmem:[%s1690_s16 + $0x10] sm:$0xff] (!%p895_p1)  ;;  %v1400_v3 = vmov (!%p895_p1), 0.0   ;;  %vm1401_vm0 = vmmov (!%p895_p1), 0   ;;  %v1402_v7 = vmov (!%p895_p1), 0  }
  0x7b   : > { %315 = sbr.rel (%p895_p1) target bundleno = 349 (0x15d), region = 52  ;;  %937 = vmatprep.subr.bf16.mxu0 (!%p895_p1), %v1400_v3  ;;  %376 = vst [vmem:[#allocation4] sm:$0xff] (!%p895_p1), %v1400_v3  ;;  %377 = vst [vmem:[#allocation4 + $0x8] sm:$0xff] (!%p895_p1), %v1400_v3  ;;  %v320_v4 = vpack.c.bf16 (!%p895_p1), %v317_v1, %v316_v0  ;;  %v319_v5 = vld [vmem:[%s1690_s16 + $0x18] sm:$0xff] (!%p895_p1)  ;;  %941 = vmatprep.mubr.msk.bf16.mxu0 (!%p895_p1), %vm1401_vm0, %v1400_v3  ;;  %v322_v9 = vld [vmem:[%s1888_s2] sm:$0xf] (!%p895_p1) }
  0x7c   : > { %378 = vst [vmem:[#allocation4 + $0x10] sm:$0xff] (!%p895_p1), %v1400_v3  ;;  %379 = vst [vmem:[#allocation4 + $0x18] sm:$0xff] (!%p895_p1), %v1400_v3  ;;  %v323_v6 = vld [vmem:[%s1889_s3] sm:$0xff] (!%p895_p1)  ;;  %1149 = vset.pattern.permute.xlu0 (!%p895_p1), %v1402_v7  ;;  %v321_v8 = vpack.c.bf16 (!%p895_p1), %v319_v5, %v318_v2  ;;  %vm329_vm1 = vcmask (!%p895_p1), 261120   ;;  %v1403_v10 = vmov (!%p895_p1), -inf  }
  0x7d   : > { %380 = vst [vmem:[#allocation4 + $0x20] sm:$0xff] (!%p895_p1), %v1400_v3  ;;  %938 = vmatpush3.bf16.msra.mxu0 (!%p895_p1), %v320_v4  ;;  %326 = vperm.xlu0 (!%p895_p1), %1149, %v323_v6   ;;  %375 = vst [vmem:[#allocation3] sm:$0x1] (!%p895_p1), %v1403_v10 }
  0x7e   : > { %939 = vmatprep.subr.bf16.mxu0 (!%p895_p1), %v1400_v3 }
  0x81   : > { %940 = vmatpush3.bf16.msra.mxu0 (!%p895_p1), %v321_v8 }
  0x84   : > { %942 = vmatmul.mubr.msk.bf16.vlgmr.msra.gmra.mrb[0].mxu0 %vm329_vm1, %v322_v9 }
  0xfc   : > { %v327_v11 = vpop.permute.xlu0 %326 }
 0x157   : > { %v367_v12 = vpop.f32.mrb[0].mxu0 }
 0x158   : > { %v368_v13 = vadd.f32 %v367_v12, %v327_v11  ;;  %v943_v14 = vpop.f32.mrb[1].mxu0 }
 0x159   : > { %v370_v15 = vpop.f32.mrb[2].mxu0 }
 0x15a   : > { %v373_v16 = vpack.c.bf16 %v368_v13, %v368_v13  ;;  %v944_v17 = vpop.f32.mrb[3].mxu0 }
 0x15c   : > { %374 = vst [vmem:[#allocation2] sm:$0xf] %v373_v16 }
 0x15d PF: > { %v381_v18 = vld [vmem:[%s1697_s11] sm:$0xf]  ;;  %vm429_vm2 = vcmask 1043456   ;;  %vm404_vm3 = vcmask 64512   ;;  %v1404_v29 = vmov 0.0   ;;  %vm1405_vm4 = vmmov 0  }
 0x15e   : > { %388 = vxpose.xlu0.c.b16.start.end [1/1] (short) %v381_v18, 128  ;;  %991 = vmatprep.subr.bf16.mxu1 %v1404_v29  ;;  %v557_v63 = vlaneseq  ;;  %p908_p10 = scmp.ne.s32.totalorder %s1367_s26, 1 }
 0x15f   : > { %983 = vmatprep.mubr.msk.bf16.mxu1 %vm1405_vm4, %v1404_v29  ;;  %v530_v4 = vld [vmem:[#allocation3] sm:$0x1]  ;;  %s722_s10 = sld [smem:[#allocation5]] (!%p908_p10) }
 0x160   : > { %v558_v2 = vshrl.u32 %v557_v63, 7 }
 0x162   : > { %v1755_v6 = vsub.s32 0, %v558_v2 }
 0x163   : > { %v387_v19 = vld [vmem:[#allocation2] sm:$0xf] }
 0x164   : > { %1007 = vmatprep.subr.msk.bf16.mxu0 %vm429_vm2, %v387_v19  ;;  %v431_v20 = vsel %vm429_vm2, %v387_v19, 0 }
 0x165   : > { %946 = vmatpush3.bf16.msra.mxu0 %v431_v20 }
 0x166   : > { %963 = vmatprep.subr.bf16.mxu0 %v1404_v29 }
 0x1c4   : > { %v396_v21 = vpop.trf.xlu0 }
 0x1c5   : > { %947 = vmatprep.mubr.msk.bf16.mxu0 %vm404_vm3, %v396_v21 }
 0x1c8   : > { %v397_v22 = vpop.trf.xlu0 }
 0x1c9   : > { %948 = vmatmul.mubr.msk.bf16.vlgmr.msra.gmra.mrb[0].mxu0 %vm404_vm3, %v397_v22 }
 0x1cc   : > { %v398_v23 = vpop.trf.xlu0 }
 0x1cd   : > { %951 = vmatprep.mubr.msk.bf16.mxu0 %vm404_vm3, %v398_v23 }
 0x1d0   : > { %v399_v24 = vpop.trf.xlu0 }
 0x1d1   : > { %952 = vmatmul.mubr.msk.bf16.gmra.mrb[4].mxu0 %vm404_vm3, %v399_v24 }
 0x1d4   : > { %v400_v25 = vpop.trf.xlu0 }
 0x1d5   : > { %955 = vmatprep.mubr.msk.bf16.mxu0 %vm404_vm3, %v400_v25 }
 0x1d8   : > { %v401_v26 = vpop.trf.xlu0 }
 0x1d9   : > { %956 = vmatmul.mubr.msk.bf16.gmra.mrb[8].mxu0 %vm404_vm3, %v401_v26 }
 0x1dc   : > { %v402_v27 = vpop.trf.xlu0 }
 0x1dd   : > { %959 = vmatprep.mubr.msk.bf16.mxu0 %vm404_vm3, %v402_v27 }
 0x1e0   : > { %v403_v28 = vpop.trf.xlu0 }
 0x1e1   : > { %960 = vmatmul.mubr.msk.bf16.gmra.mrb[12].mxu0 %vm404_vm3, %v403_v28 }
 0x1e2   : > { %979 = vmatprep.mubr.msk.bf16.mxu0 %vm1405_vm4, %v1404_v29 }
 0x29c   : > { %v949_v30 = vpop.f32.mrb[0].mxu0 }
 0x29d   : > { %v467_v31 = vpop.f32.mrb[1].mxu0 }
 0x29e   : > { %v950_v32 = vpop.f32.mrb[2].mxu0 }
 0x29f   : > { %v470_v33 = vpop.f32.mrb[3].mxu0 }
 0x2a4   : > { %v1731_v34 = vpop.f32.mrb[4].mxu0 }
 0x2a5   : > { %v533_v35 = vmax.f32 %v949_v30, %v1731_v34  ;;  %v483_v36 = vpop.f32.mrb[5].mxu0 }
 0x2a6   : > { %v531_v37 = vmax.f32 %v467_v31, %v483_v36  ;;  %v1734_v38 = vpop.f32.mrb[6].mxu0 }
 0x2a7   : > { %v534_v39 = vmax.f32 %v950_v32, %v1734_v38  ;;  %v486_v40 = vpop.f32.mrb[7].mxu0 }
 0x2a8   : > { %v532_v41 = vmax.f32 %v470_v33, %v486_v40 }
 0x2ac   : > { %v1737_v42 = vpop.f32.mrb[8].mxu0 }
 0x2ad   : > { %v537_v43 = vmax.f32 %v533_v35, %v1737_v42  ;;  %v1740_v44 = vpop.f32.mrb[9].mxu0 }
 0x2ae   : > { %v535_v45 = vmax.f32 %v531_v37, %v1740_v44  ;;  %v1743_v46 = vpop.f32.mrb[10].mxu0 }
 0x2af   : > { %v538_v47 = vmax.f32 %v534_v39, %v1743_v46  ;;  %v502_v48 = vpop.f32.mrb[11].mxu0 }
 0x2b0   : > { %v536_v49 = vmax.f32 %v532_v41, %v502_v48 }
 0x2b4   : > { %v1746_v50 = vpop.f32.mrb[12].mxu0 }
 0x2b5   : > { %v541_v51 = vmax.f32 %v537_v43, %v1746_v50  ;;  %v1749_v52 = vpop.f32.mrb[13].mxu0 }
 0x2b6   : > { %v539_v53 = vmax.f32 %v535_v45, %v1749_v52  ;;  %v1752_v54 = vpop.f32.mrb[14].mxu0 }
 0x2b7   : > { %v542_v55 = vmax.f32 %v538_v47, %v1752_v54  ;;  %v518_v56 = vpop.f32.mrb[15].mxu0 }
 0x2b8   : > { %v540_v57 = vmax.f32 %v536_v49, %v518_v56 }
 0x2b9   : > { %v544_v58 = vmax.f32 %v541_v51, %v542_v55 }
 0x2ba   : > { %v543_v59 = vmax.f32 %v539_v53, %v540_v57 }
 0x2bc   : > { %v545_v60 = vmax.f32 %v543_v59, %v544_v58 }
 0x2be   : > { %v546_v61 = vrot.slane %v545_v60, 4 }
 0x2c0   : > { %v547_v62 = vmax.f32 %v545_v60, %v546_v61 }
 0x2c2   : > { %v548_v0 = vrot.slane %v547_v62, 2 }
 0x2c4   : > { %v549_v1 = vmax.f32 %v547_v62, %v548_v0 }
 0x2c6   : > { %v550_v3 = vrot.slane %v549_v1, 1 }
 0x2c8   : > { %v551_v5 = vmax.f32 %v549_v1, %v550_v3 }
 0x2ca   : > { %v552_v7 = vmax.f32 %v530_v4, %v551_v5 }
 0x2cc   : > { %v553_v8 = vsub.f32 %v530_v4, %v552_v7  ;;  %v560_v9 = vrot.slane %v552_v7, %v1755_v6  ;;  %716 = vst [vmem:[#allocation3] sm:$0x1] %v552_v7  ;;  %v1150_v7 = vld [vmem:[%s1697_s11 + $0x4] sm:$0xff]  }
 0x2ce   : > { %v554_v10 = vmul.f32 1.442695, %v553_v8  ;;  %v575_v11 = vsub.f32 %v518_v56, %v560_v9  ;;  %v562_v12 = vsub.f32 %v467_v31, %v560_v9  ;;  %v563_v13 = vsub.f32 %v470_v33, %v560_v9  ;;  %v1151_v8 = vld [vmem:[%s1697_s11 + $0xc] sm:$0xff]  }
 0x2cf   : > { %v564_v14 = vsub.f32 %v949_v30, %v560_v9  ;;  %v565_v15 = vsub.f32 %v950_v32, %v560_v9  ;;  %v566_v16 = vsub.f32 %v483_v36, %v560_v9  ;;  %v567_v17 = vsub.f32 %v486_v40, %v560_v9 }
 0x2d0   : > { %1153 = vpow2.f32 %v554_v10  ;;  %v604_v18 = vmul.f32 1.442695, %v575_v11  ;;  %v578_v19 = vmul.f32 1.442695, %v562_v12  ;;  %v580_v20 = vmul.f32 1.442695, %v563_v13 }
 0x2d1   : > { %v582_v21 = vmul.f32 1.442695, %v564_v14  ;;  %v568_v22 = vsub.f32 %v1731_v34, %v560_v9  ;;  %v584_v23 = vmul.f32 1.442695, %v565_v15  ;;  %v569_v24 = vsub.f32 %v1734_v38, %v560_v9  ;;  %v618_v10 = vld [vmem:[#allocation4] sm:$0xff]  ;;  %v620_v11 = vld [vmem:[#allocation4 + $0x10] sm:$0xff] }
 0x2d2   : > { %1155 = vpow2.f32 %v604_v18  ;;  %v570_v25 = vsub.f32 %v1740_v44, %v560_v9  ;;  %v586_v26 = vmul.f32 1.442695, %v566_v16  ;;  %v571_v27 = vsub.f32 %v502_v48, %v560_v9  ;;  %v619_v12 = vld [vmem:[#allocation4 + $0x8] sm:$0xff]  ;;  %v621_v13 = vld [vmem:[#allocation4 + $0x18] sm:$0xff] }
 0x2d3   : > { %1157 = vpow2.f32 %v578_v19  ;;  %v572_v28 = vsub.f32 %v1737_v42, %v560_v9  ;;  %v588_v30 = vmul.f32 1.442695, %v567_v17  ;;  %v573_v31 = vsub.f32 %v1743_v46, %v560_v9 }
 0x2d4   : > { %1159 = vpow2.f32 %v580_v20  ;;  %v590_v32 = vmul.f32 1.442695, %v568_v22  ;;  %v574_v33 = vsub.f32 %v1749_v52, %v560_v9  ;;  %v592_v34 = vmul.f32 1.442695, %v569_v24 }
 0x2d5   : > { %1161 = vpow2.f32 %v582_v21  ;;  %v576_v35 = vsub.f32 %v1746_v50, %v560_v9  ;;  %v577_v36 = vsub.f32 %v1752_v54, %v560_v9  ;;  %v594_v37 = vmul.f32 1.442695, %v570_v25  ;;  %v1152_v9 = vld [vmem:[%s1697_s11 + $0x14] ss:$0 sps:$4 sm:$0xff]  }
 0x2d6   : > { %1163 = vpow2.f32 %v584_v23  ;;  %v596_v38 = vmul.f32 1.442695, %v571_v27  ;;  %v598_v39 = vmul.f32 1.442695, %v572_v28  ;;  %v600_v41 = vmul.f32 1.442695, %v573_v31 }
 0x2d7   : > { %1165 = vpow2.f32 %v586_v26  ;;  %v602_v42 = vmul.f32 1.442695, %v574_v33  ;;  %v606_v45 = vmul.f32 1.442695, %v576_v35  ;;  %v608_v47 = vmul.f32 1.442695, %v577_v36 }
 0x2d8   : > { %1167 = vpow2.f32 %v588_v30  ;;  %v622_v30 = vld [vmem:[#allocation4 + $0x20] sm:$0xff] }
 0x2d9   : > { %1169 = vpow2.f32 %v590_v32 }
 0x2da   : > { %v1154_v40 = vpop.eup %1153  ;;  %1171 = vpow2.f32 %v592_v34 }
 0x2db   : > { %1173 = vpow2.f32 %v594_v37  ;;  %v1767_v43 = vrot.slane %v1154_v40, %v1755_v6 }
 0x2dc   : > { %v1156_v44 = vpop.eup %1155  ;;  %1175 = vpow2.f32 %v596_v38  ;;  %v724_v38 = vstv (!%p908_p10), %s722_s10 }
 0x2dd   : > { %v1158_v46 = vpop.eup %1157  ;;  %1177 = vpow2.f32 %v598_v39  ;;  %v629_v14 = vmul.f32 %v1767_v43, %v618_v10  ;;  %v631_v15 = vmul.f32 %v1767_v43, %v620_v11  ;;  %v630_v22 = vmul.f32 %v1767_v43, %v619_v12 }
 0x2de   : > { %v1160_v48 = vpop.eup %1159  ;;  %1179 = vpow2.f32 %v600_v41  ;;  %v633_v31 = vmul.f32 %v1767_v43, %v622_v30 }
 0x2df   : > { %v1162_v49 = vpop.eup %1161  ;;  %v610_v50 = vpack.c.bf16 %v1160_v48, %v1158_v46  ;;  %1181 = vpow2.f32 %v602_v42  ;;  %v738_v46 = vld [vmem:[%s1690_s16] sm:$0xff] (!%p908_p10)  ;;  %v740_v48 = vld [vmem:[%s1690_s16 + $0x10] sm:$0xff] (!%p908_p10) }
 0x2e0   : > { %v1164_v51 = vpop.eup %1163  ;;  %1183 = vpow2.f32 %v606_v45 }
 0x2e1   : > { %v1166_v52 = vpop.eup %1165  ;;  %964 = vmatpush3.bf16.msra.mxu0 %v610_v50  ;;  %999 = vmatpush3.bf16.msra.mxu1 %v610_v50  ;;  %v611_v53 = vpack.c.bf16 %v1164_v51, %v1162_v49  ;;  %1185 = vpow2.f32 %v608_v47  ;;  %v739_v47 = vld [vmem:[%s1690_s16 + $0x8] sm:$0xff] (!%p908_p10)  ;;  %v741_v49 = vld [vmem:[%s1690_s16 + $0x18] sm:$0xff] (!%p908_p10) }
 0x2e2   : > { %v1168_v54 = vpop.eup %1167  ;;  %965 = vmatprep.subr.bf16.mxu0 %v1404_v29  ;;  %992 = vmatprep.subr.bf16.mxu1 %v1404_v29 }
 0x2e3   : > { %v1170_v55 = vpop.eup %1169  ;;  %v612_v56 = vpack.c.bf16 %v1168_v54, %v1166_v52 }
 0x2e4   : > { %v1172_v57 = vpop.eup %1171 }
 0x2e5   : > { %v1174_v58 = vpop.eup %1173  ;;  %966 = vmatpush3.bf16.msra.mxu0 %v611_v53  ;;  %1000 = vmatpush3.bf16.msra.mxu1 %v611_v53  ;;  %v613_v59 = vpack.c.bf16 %v1172_v57, %v1170_v55 }
 0x2e6   : > { %v1176_v60 = vpop.eup %1175  ;;  %967 = vmatprep.subr.bf16.mxu0 %v1404_v29  ;;  %993 = vmatprep.subr.bf16.mxu1 %v1404_v29 }
 0x2e7   : > { %v1178_v61 = vpop.eup %1177  ;;  %v614_v62 = vpack.c.bf16 %v1176_v60, %v1174_v58 }
 0x2e8   : > { %v1180_v63 = vpop.eup %1179 }
 0x2e9   : > { %v1182_v0 = vpop.eup %1181  ;;  %968 = vmatpush3.bf16.msra.mxu0 %v612_v56  ;;  %1001 = vmatpush3.bf16.msra.mxu1 %v612_v56  ;;  %v615_v1 = vpack.c.bf16 %v1180_v63, %v1178_v61 }
 0x2ea   : > { %v1184_v2 = vpop.eup %1183  ;;  %969 = vmatprep.subr.bf16.mxu0 %v1404_v29  ;;  %994 = vmatprep.subr.bf16.mxu1 %v1404_v29  ;;  %v616_v3 = vpack.c.bf16 %v1156_v44, %v1182_v0 }
 0x2eb   : > { %v1186_v4 = vpop.eup %1185 }
 0x2ec   : > { %v617_v5 = vpack.c.bf16 %v1186_v4, %v1184_v2 }
 0x2ed   : > { %970 = vmatpush3.bf16.msra.mxu0 %v613_v59  ;;  %1002 = vmatpush3.bf16.msra.mxu1 %v613_v59 }
 0x2ee   : > { %971 = vmatprep.subr.bf16.mxu0 %v1404_v29  ;;  %995 = vmatprep.subr.bf16.mxu1 %v1404_v29 }
 0x2f1   : > { %972 = vmatpush3.bf16.msra.mxu0 %v614_v62  ;;  %1003 = vmatpush3.bf16.msra.mxu1 %v614_v62 }
 0x2f2   : > { %973 = vmatprep.subr.bf16.mxu0 %v1404_v29  ;;  %996 = vmatprep.subr.bf16.mxu1 %v1404_v29 }
 0x2f5   : > { %974 = vmatpush3.bf16.msra.mxu0 %v615_v1  ;;  %1004 = vmatpush3.bf16.msra.mxu1 %v615_v1 }
 0x2f6   : > { %975 = vmatprep.subr.bf16.mxu0 %v1404_v29  ;;  %997 = vmatprep.subr.bf16.mxu1 %v1404_v29 }
 0x2f9   : > { %976 = vmatpush3.bf16.msra.mxu0 %v616_v3  ;;  %1005 = vmatpush3.bf16.msra.mxu1 %v616_v3 }
 0x2fa   : > { %977 = vmatprep.subr.bf16.mxu0 %v1404_v29  ;;  %998 = vmatprep.subr.bf16.mxu1 %v1404_v29 }
 0x2fd   : > { %978 = vmatpush3.bf16.msra.mxu0 %v617_v5  ;;  %1006 = vmatpush3.bf16.msra.mxu1 %v617_v5 }
 0x300   : > { %980 = vmatmul.mubr.bf16.vlgmr.msra.gmra.mrb[16].mxu0 %v1150_v7  ;;  %984 = vmatmul.mubr.bf16.vlgmr.msra.gmra.mrb[0].mxu1 %v1151_v8 }
 0x301   : > { %987 = vmatprep.mubr.msk.bf16.mxu1 %vm1405_vm4, %v1404_v29  ;;  %v632_v29 = vmul.f32 %v1767_v43, %v621_v13 }
 0x308   : > { %988 = vmatmul.mubr.bf16.gmra.mrb[4].mxu1 %v1152_v9 }
 0x3d3   : > { %v684_v16 = vpop.f32.mrb[16].mxu0  ;;  %v692_v17 = vpop.f32.mrb[0].mxu1 }
 0x3d4   : > { %v706_v18 = vadd.f32 %v684_v16, %v629_v14  ;;  %v708_v19 = vadd.f32 %v692_v17, %v631_v15  ;;  %v981_v20 = vpop.f32.mrb[17].mxu0  ;;  %v985_v21 = vpop.f32.mrb[1].mxu1 }
 0x3d5   : > { %v687_v23 = vpop.f32.mrb[18].mxu0  ;;  %v695_v24 = vpop.f32.mrb[2].mxu1 }
 0x3d6   : > { %711 = vst [vmem:[#allocation4] sm:$0xff] %v706_v18  ;;  %713 = vst [vmem:[#allocation4 + $0x10] sm:$0xff] %v708_v19  ;;  %v707_v25 = vadd.f32 %v687_v23, %v630_v22  ;;  %v709_v26 = vadd.f32 %v695_v24, %v632_v29  ;;  %v986_v27 = vpop.f32.mrb[3].mxu1  ;;  %v982_v28 = vpop.f32.mrb[19].mxu0 }
 0x3d8   : > { %712 = vst [vmem:[#allocation4 + $0x8] sm:$0xff] %v707_v25  ;;  %714 = vst [vmem:[#allocation4 + $0x18] sm:$0xff] %v709_v26  ;;  %720 = sbr.rel (%p908_p10) target bundleno = 1019 (0x3fb), region = 56 }
 0x3db   : > { %v700_v32 = vpop.f32.mrb[4].mxu1 }
 0x3dc   : > { %v710_v33 = vadd.f32 %v700_v32, %v633_v31  ;;  %v989_v34 = vpop.f32.mrb[5].mxu1 }
 0x3dd   : > { %v703_v35 = vpop.f32.mrb[6].mxu1  ;;  %v726_v41 = vld [vmem:[#allocation4] sm:$0xff] (!%p908_p10)  ;;  %v728_v43 = vld [vmem:[#allocation4 + $0x10] sm:$0xff] (!%p908_p10) }
 0x3de   : > { %715 = vst [vmem:[#allocation4 + $0x20] sm:$0xff] %v710_v33  ;;  %v990_v36 = vpop.f32.mrb[7].mxu1 }
 0x3df   : > { %v727_v42 = vld [vmem:[#allocation4 + $0x8] sm:$0xff]  ;;  %v729_v44 = vld [vmem:[#allocation4 + $0x18] sm:$0xff] }
 0x3e5   : > { %v721_v37 = vld [vmem:[#allocation4 + $0x20] sm:$0x1] }
 0x3e6   : > { %1187 = vrcp.f32 %v721_v37 }
 0x3f0   : > { %v1188_v39 = vpop.eup %1187 }
 0x3f1   : > { %v725_v40 = vmul.f32 %v1188_v39, %v724_v38 }
 0x3f3   : > { %v733_v45 = vrot.slane %v725_v40, %v1755_v6 }
 0x3f5   : > { %v734_v50 = vmul.f32 %v733_v45, %v726_v41  ;;  %v735_v51 = vmul.f32 %v733_v45, %v727_v42  ;;  %v736_v52 = vmul.f32 %v733_v45, %v728_v43  ;;  %v737_v53 = vmul.f32 %v733_v45, %v729_v44 }
 0x3f7   : > { %v742_v54 = vadd.f32 %v738_v46, %v734_v50  ;;  %v743_v55 = vadd.f32 %v739_v47, %v735_v51  ;;  %v744_v56 = vadd.f32 %v740_v48, %v736_v52  ;;  %v745_v57 = vadd.f32 %v741_v49, %v737_v53 }
 0x3f9   : > { %746 = vst [vmem:[%s1703_s0] sm:$0xff] %v742_v54  ;;  %747 = vst [vmem:[%s1703_s0 + $0x8] sm:$0xff] %v743_v55 }
 0x3fa   : > { %748 = vst [vmem:[%s1703_s0 + $0x10] sm:$0xff] %v744_v56  ;;  %749 = vst [vmem:[%s1703_s0 + $0x18] sm:$0xff] %v745_v57 }
 0x3fb PF: > { %s1941_s26 = sld [smem:[#allocation16_spill]]  ;;  %s1942_s20 = sld [smem:[#allocation20_spill]] }
 0x3fc   : > { %s910_s5 = sshll.u32 %s1375_s27, 3  ;;  %s765_s18 = sshll.u32 %s1703_s0, 4  ;;  %s1806_s18 = int_to_ptr.vmem [resolvable:$true] %s765_s18 }
 0x3fd   : > { %s1943_s16 = sld [smem:[#allocation26_spill]]  ;;  %s751_s19 = scalar_lea.sflag [#allocation8], %s1686_s29 }
 0x3fe   : > { %s1249_s9 = scalar_lea.vmem %s1806_s18, 512  ;;  %s1406_s27 = smov [#allocation11]  }
 0x3ff   : > { %p1250_p0 = scmp.ne.s32.totalorder %s1806_s18, %s1249_s9  ;;  %s1253_s11 = sshll.u32 %s1406_s27, 4  ;;  %s1254_s11 = int_to_ptr.vmem [resolvable:$false] %s1253_s11 }
 0x400   : > { %s1255_s0 = scalar_lea.vmem %s1254_s11, 1024  ;;  %p1256_p6 = scmp.lt.s32.totalorder %s1806_s18, %s1254_s11 }
 0x401   : > { %s762_s12 = sadd.s32 %s1941_s26, %s910_s5  ;;  %p1944_p4 = scmp.ne.s32.totalorder %s1942_s20, 0 }
 0x402   : > { %s911_s17 = sshll.u32 %s762_s12, 7  ;;  %p1257_p8 = scmp.lt.s32.totalorder %s1255_s0, %s1249_s9 }
 0x403   : > { %s1811_s6 = scalar_lea.hbm %s1943_s16, %s911_s17  ;;  %p1251_p7 = pnand %p1250_p0, %p1944_p4 }
 0x404   : > { %p1258_p12 = por %p1257_p8, %p1256_p6 }
 0x405   : > { %p1252_p3 = pneg %p1251_p7 }
 0x407   : > { %p1259_p11 = pnand %p1258_p12, %p1252_p3 }
 0x409   : > { %1262 = shalt.err (!%p1259_p11)
}
 0x40a   : > { %s1263_s13 = scalar_lea.hbm %s1811_s6, 512  ;;  %s1267_s15 = scalar_lea.hbm %s1943_s16, 2048 }
 0x40b   : > { %p1264_p5 = scmp.ne.s32.totalorder %s1811_s6, %s1263_s13  ;;  %p1268_p9 = scmp.lt.u32.totalorder %s1811_s6, %s1943_s16 }
 0x40c   : > { %p1269_p1 = scmp.lt.u32.totalorder %s1267_s15, %s1263_s13  ;;  %p1271_p0 = scmp.lt.u32.totalorder %s1263_s13, %s1811_s6 }
 0x40d   : > { %p1265_p13 = pnand %p1264_p5, %p1944_p4 }
 0x40e   : > { %p1270_p10 = por %p1269_p1, %p1268_p9 }
 0x40f   : > { %p1266_p2 = pneg %p1265_p13 }
 0x410   : > { %p1272_p7 = por %p1271_p0, %p1270_p10 }
 0x412   : > { %p1273_p3 = pnand %p1272_p7, %p1266_p2 }
 0x414   : > { %1276 = shalt.err (!%p1273_p3)
}
 0x415   : > { %s1407_s5 = smov 128   ;;  %s1408_s12 = smov 256  }
 0x416   : > { %s1409_s17 = smov 8  }
 0x417   : > { %1015 = dma.vmem_to_hbm [thread:$0]  (%p1944_p4), %s1806_s18, 512, %s1811_s6, %s751_s19, %s1407_s5, %s1408_s12, %s1409_s17  }
 0x418 PF: > { %s1945_s28 = sld [smem:[#allocation19_spill]]  ;;  %s1946_s14 = sld [smem:[#allocation15_spill]] }
 0x419   : > { %s1947_s9 = sld [smem:[#allocation21_spill]] }
 0x41e   : > { %p1029_p6 = scmp.ge.s32.totalorder %s1945_s28, 2  ;;  %s780_s27 = sand.u32 1, %s1946_s14  }
 0x41f   : > { %p1948_p8 = scmp.ne.s32.totalorder %s1947_s9, 0  ;;  %s781_s11 = scalar_lea.sflag [#allocation8], %s780_s27 }
 0x421   : > { %p1025_p12 = pnand %p1029_p6, %p1948_p8 }
 0x423   : > { %1338 = dma.done.wait (!%p1025_p12), %s781_s11, 512  }
 0x424   : > { %1340 = vsyncadd (!%p1025_p12), %s781_s11, 4294966784  ;;  %s25_s6 = sadd.s32 1, %s1945_s28   ;;  %s1950_s26 = sld [smem:[#allocation17_spill]] }
 0x425   : > { %p1842_p11 = scmp.ge.s32.totalorder %s25_s6, 10   ;;  %s1951_s29 = sld [smem:[#allocation18_spill]] }
 0x426   : > { %s1952_s28 = sld [smem:[#allocation22_spill]]  ;;  %s1953_s18 = sld [smem:[#allocation23_spill]] }
 0x427   : > { %s1954_s19 = sld [smem:[#allocation24_spill]]  ;;  %s1955_s20 = smov %s1347_s21 }
 0x428   : > { %s1956_s21 = smov %s1351_s22  ;;  %s1957_s22 = smov %s1650_s7 }
 0x429   : > { %s1958_s23 = smov %s1359_s24  ;;  %s1959_s24 = smov %s1363_s25 }
 0x42a   : > { %s1960_s25 = smov %s1645_s4  ;;  %s1962_s27 = smov %s1387_s30 }
 0x42b   : > { %s1961_s4 = smov %s1951_s29  ;;  %24 = sbr.rel (!%p1842_p11) target bundleno = 16 (0x10), region = 106 }
 0x42c   : > { %s1963_s29 = smov %s1953_s18 }
 0x42d   : > { %s1964_s30 = smov %s1954_s19 }
 0x432   :  { %786 = vsyncpa [#allocation7], 1 }
 0x433   :  { %788 = vsyncpa [#allocation7 + $0x1], 1 }
 0x434   :  { %789 = vsyncpa [#allocation10], 1 }
 0x435   :  { %791 = vsyncpa [#allocation10 + $0x1], 1 }
 0x436   :  { %792 = vsyncpa [#allocation8], 1 }
 0x437   :  { %794 = vsyncpa [#allocation8 + $0x1], 1 }

</bundles_post_ra>
